<compile_context>
chip_gen: v7x
topology: tpu7x:2x2x1
jax: 0.10.0
libtpu: 0.0.40
codegen_flags: <defaults>
</compile_context>

<pallas_src>
import numpy as np
import jax
import jax.numpy as jnp
from jax.experimental import pallas as pl
from jax.experimental.pallas import tpu as pltpu


def _pick_tile(n, candidates):
    """Largest candidate tile that divides n; falls back to the full extent."""
    for c in candidates:
        if n % c == 0:
            return c
    return n


def _maybe_buffered_spec(block_shape, index_map, depth):
    """BlockSpec with deeper pipelining if this JAX exposes pipeline_mode."""
    if depth is None or depth <= 2:
        return pl.BlockSpec(block_shape, index_map)
    try:
        return pl.BlockSpec(block_shape, index_map,
                            pipeline_mode=pl.Buffered(depth))
    except Exception:  # older JAX without pipeline_mode / Buffered
        return pl.BlockSpec(block_shape, index_map)


# ----------------------------------------------------------------------------
# Kernel 1: pixel normalization  (x - mean) / std,  NCHW, tiled over (B, H)
# ----------------------------------------------------------------------------
def _make_normalize_kernel(mean_np, inv_std_np, out_dtype):
    C = int(mean_np.shape[0])

    def kernel(img_ref, out_ref):
        # Per-channel scalar constants baked into the kernel: no per-step
        # mean/std DMAs, no padded (8,128) VMEM micro-blocks.  C is tiny so a
        # static unroll is free.
        for c in range(C):
            x = img_ref[0, c].astype(jnp.float32)          # (ht, W); uint8 ok
            out_ref[0, c] = ((x - float(mean_np[c])) * float(inv_std_np[c])
                             ).astype(out_dtype)
    return kernel


def normalize_images(images, pixel_mean, pixel_std, *, h_tile=None,
                     out_dtype=jnp.float32):
    """(x - mean) / std over NCHW images.

    `images` may be uint8 (the cast is done inside the kernel, so the HBM
    read side of this memory-bound kernel is 4x cheaper than pre-casting).
    """
    B, C, H, W = images.shape
    # Pure HBM-bandwidth kernel: big row tiles (multiples of 32 keep uint8
    # sublane packing aligned).  512x1024 f32 output block = 2 MiB/buffer,
    # fine on v5e/v6e/v7x.
    ht = _pick_tile(H, (512, 256, 128, 64, 32)) if h_tile is None else h_tile
    assert H % ht == 0, f"h_tile={ht} must divide H={H}"
    mean_np = np.asarray(pixel_mean, np.float32).reshape(-1)
    inv_std_np = (1.0 / np.asarray(pixel_std, np.float32)).reshape(-1)
    return pl.pallas_call(
        _make_normalize_kernel(mean_np, inv_std_np, out_dtype),
        out_shape=jax.ShapeDtypeStruct((B, C, H, W), out_dtype),
        grid=(B, H // ht),
        in_specs=[pl.BlockSpec((1, C, ht, W), lambda b, hh: (b, 0, hh, 0))],
        out_specs=pl.BlockSpec((1, C, ht, W), lambda b, hh: (b, 0, hh, 0)),
        compiler_params=pltpu.CompilerParams(
            dimension_semantics=("parallel", "parallel")),
    )(images)


# ----------------------------------------------------------------------------
# Kernel 2: temperature softmax over class logits — one single-step call on a
#           sublane-dense (B*Q, K+1) slab (negligible work; don't spend grid
#           steps / launches on it).
# ----------------------------------------------------------------------------
def _make_softmax_kernel(weight):
    def kernel(cls_ref, out_ref):
        z = weight * cls_ref[...].astype(jnp.float32)          # (B*Q, K+1)
        z = z - jnp.max(z, axis=-1, keepdims=True)
        e = jnp.exp(z)
        out_ref[...] = e * pl.reciprocal(jnp.sum(e, axis=-1, keepdims=True),
                                         approx=False)
    return kernel


def temperature_softmax(pred_logits, weight):
    B, Q, Kp1 = pred_logits.shape
    flat = pred_logits.reshape(B * Q, Kp1)
    out = pl.pallas_call(
        _make_softmax_kernel(float(weight)),
        out_shape=jax.ShapeDtypeStruct((B * Q, Kp1), jnp.float32),
    )(flat)
    return out.reshape(B, Q, Kp1)


# ----------------------------------------------------------------------------
# Bilinear interpolation matrix (matches torch F.interpolate align_corners=False)
# ----------------------------------------------------------------------------
def _bilinear_matrix(out_size, in_size):
    scale = in_size / out_size
    i = np.arange(out_size, dtype=np.float64)
    src = (i + 0.5) * scale - 0.5
    src = np.maximum(src, 0.0)                      # PyTorch clamps negatives to 0
    i0 = np.minimum(np.floor(src).astype(np.int64), in_size - 1)
    i1 = np.minimum(i0 + 1, in_size - 1)
    w1 = src - i0
    w0 = 1.0 - w1
    M = np.zeros((out_size, in_size), dtype=np.float32)
    M[np.arange(out_size), i0] += w0
    M[np.arange(out_size), i1] += w1
    return M


# ----------------------------------------------------------------------------
# Kernel 3 (FUSED): resize(selected low-res masks) -> binary mask (uint8) +
#                   per-instance stats, accumulated across H tiles.
#
# stats columns: [0]=sum(sigmoid*pm)  [1]=sum(pm)  [2]=xmin  [3]=ymin
#                [4]=xmax             [5]=ymax     [6,7]=0
# ----------------------------------------------------------------------------
def _make_fused_kernel(score_sigmoid_dtype):
    def kernel(m_ref, wrow_ref, wcolT_ref, pm_ref, stats_ref):
        hi = pl.program_id(2)

        m = m_ref[0]                         # (Tt, h, w)  bf16 low-res logits
        wr = wrow_ref[...]                   # (Ht, h)     bf16 row-interp tile
        wc = wcolT_ref[...]                  # (w, W)      bf16 col-interp (T)
        Tt, h, w = m.shape
        Ht = wr.shape[0]
        W = wc.shape[1]

        # --- bilinear resize, bf16 in / f32 accumulate ---------------------
        # row interpolation: small batched MXU matmul over the Tt instances.
        wr_b = jnp.broadcast_to(wr[None], (Tt, Ht, h))
        t1 = jnp.einsum("tHh,thw->tHw", wr_b, m,
                        preferred_element_type=jnp.float32)        # (Tt,Ht,w)
        # column interpolation: collapse leading dims (layout-free) and do a
        # SINGLE 2-D matmul — one weight push, M=Tt*Ht, K=w, N=W — instead of
        # Tt small batched matmuls + a large broadcast of the weight matrix.
        t1_2d = t1.astype(wc.dtype).reshape(Tt * Ht, w)
        r = jnp.dot(t1_2d, wc,
                    preferred_element_type=jnp.float32).reshape(Tt, Ht, W)

        # --- binary mask: the only full-resolution HBM write (uint8) -------
        pmb = r > 0.0
        pm_ref[0] = pmb.astype(pm_ref.dtype)

        # --- per-instance partial stats for this H tile ---------------------
        # sigmoid in score_sigmoid_dtype (bf16 on v6e/v7x halves the EUP cost
        # and the sigmoid temporary; pass float32 on v5e).
        sig = jax.nn.sigmoid(r.astype(score_sigmoid_dtype))
        masked_sig = jnp.where(pmb, sig, jnp.zeros_like(sig))
        num_rows = jnp.sum(masked_sig.astype(jnp.float32), axis=2)  # (Tt, Ht)
        pm_f = pmb.astype(jnp.float32)
        den_rows = jnp.sum(pm_f, axis=2)                            # (Tt, Ht)
        num = jnp.sum(num_rows, axis=1, keepdims=True)              # (Tt, 1)
        den = jnp.sum(den_rows, axis=1, keepdims=True)              # (Tt, 1)

        # bbox via presence reductions (no full (Tt,Ht,W) iota temporaries).
        col_any = jnp.sum(pm_f, axis=1) > 0.0                       # (Tt, W)
        row_any = den_rows > 0.0                                    # (Tt, Ht)
        col = jax.lax.broadcasted_iota(jnp.float32, (Tt, W), 1)
        row = jax.lax.broadcasted_iota(jnp.float32, (Tt, Ht), 1) \
            + (hi * Ht).astype(jnp.float32)
        xmin = jnp.min(jnp.where(col_any, col, 1e9), axis=1, keepdims=True)
        xmax = jnp.max(jnp.where(col_any, col, -1e9), axis=1, keepdims=True)
        ymin = jnp.min(jnp.where(row_any, row, 1e9), axis=1, keepdims=True)
        ymax = jnp.max(jnp.where(row_any, row, -1e9), axis=1, keepdims=True)

        # pack partials into an (Tt, 8) row via one-hot column selects.
        cidx = jax.lax.broadcasted_iota(jnp.int32, (Tt, 8), 1)
        partial = (num * (cidx == 0) + den * (cidx == 1) +
                   xmin * (cidx == 2) + ymin * (cidx == 3) +
                   xmax * (cidx == 4) + ymax * (cidx == 5))

        @pl.when(hi == 0)
        def _():
            stats_ref[0] = partial

        @pl.when(hi > 0)
        def _():
            cur = stats_ref[0]                                      # (Tt, 8)
            stats_ref[0] = jnp.where(
                cidx < 2, cur + partial,
                jnp.where(cidx < 4, jnp.minimum(cur, partial),
                          jnp.maximum(cur, partial)))
    return kernel


def fused_resize_gather_score(masks_low_sel, H_out, W_out, *,
                              t_tile=8, h_tile=None,
                              compute_dtype=jnp.bfloat16,
                              score_sigmoid_dtype=jnp.bfloat16,
                              input_buffer_depth=3,
                              vmem_limit_bytes=48 * 1024 * 1024):
    """masks_low_sel: (B, T, h, w) low-res logits of the already-selected
    (top-k) queries.  Returns (pred_masks uint8 (B,T,H,W), stats f32 (B,T,8)).

    Tiling defaults are v7x-safe (t_tile=8, h_tile<=128, vmem limit 48 MiB);
    on v5e/v6e you may pass t_tile=16 and/or vmem_limit_bytes up to ~96 MiB,
    and on v5e pass score_sigmoid_dtype=jnp.float32 (no bf16 VPU/EUP there).
    T is padded internally to a multiple of t_tile so the per-step f32
    intermediates stay small for any test_topk_per_image (e.g. 100).
    """
    B, T, h, w = masks_low_sel.shape
    tt = int(t_tile)
    assert tt >= 1
    T_pad = ((T + tt - 1) // tt) * tt
    ht = _pick_tile(H_out, (128, 64, 32, 16, 8)) if h_tile is None else h_tile
    assert H_out % ht == 0, f"h_tile={ht} must divide H_out={H_out}"

    wrow = jnp.asarray(_bilinear_matrix(H_out, h), dtype=compute_dtype)      # (H, h)
    wcolT = jnp.asarray(_bilinear_matrix(W_out, w).T, dtype=compute_dtype)   # (w, W)
    m = masks_low_sel.astype(compute_dtype)
    if T_pad != T:
        # zero-logit pad rows: mask = (0 > 0) = empty; sliced off below.
        m = jnp.pad(m, ((0, 0), (0, T_pad - T), (0, 0), (0, 0)))

    pred_masks_u8, stats = pl.pallas_call(
        _make_fused_kernel(score_sigmoid_dtype),
        out_shape=(
            jax.ShapeDtypeStruct((B, T_pad, H_out, W_out), jnp.uint8),  # masks
            jax.ShapeDtypeStruct((B, T_pad, 8), jnp.float32),           # stats
        ),
        grid=(B, T_pad // tt, H_out // ht),
        in_specs=[
            # the low-res mask block only changes at (b, ti) boundaries;
            # deeper buffering hides its re-fetch behind the previous H tile.
            _maybe_buffered_spec((1, tt, h, w), lambda b, ti, hh: (b, ti, 0, 0),
                                 input_buffer_depth),
            pl.BlockSpec((ht, h), lambda b, ti, hh: (hh, 0)),
            pl.BlockSpec((w, W_out), lambda b, ti, hh: (0, 0)),
        ],
        out_specs=(
            pl.BlockSpec((1, tt, ht, W_out), lambda b, ti, hh: (b, ti, hh, 0)),
            pl.BlockSpec((1, tt, 8), lambda b, ti, hh: (b, ti, 0)),
        ),
        compiler_params=pltpu.CompilerParams(
            dimension_semantics=("parallel", "parallel", "arbitrary"),
            vmem_limit_bytes=vmem_limit_bytes),
    )(m, wrow, wcolT)

    if T_pad != T:
        pred_masks_u8 = pred_masks_u8[:, :T]
        stats = stats[:, :T]
    return pred_masks_u8, stats


# ----------------------------------------------------------------------------
# Full D2Zero inference path (instance_on=True, generalized=True, cp=False,
# panoptic_on=False): mirrors D2Zero.forward (eval) + instance_inference_gzsis.
# ----------------------------------------------------------------------------
def d2zero_inference(images_raw, pred_logits, pred_masks_lowres, *,
                     pixel_mean, pixel_std, softmax_temperature,
                     test_topk_per_image, compute_dtype=jnp.bfloat16,
                     score_sigmoid_dtype=jnp.bfloat16,
                     fused_t_tile=8, fused_vmem_limit_bytes=48 * 1024 * 1024):
    B, C, H, W = images_raw.shape
    _, Q, Kp1 = pred_logits.shape
    K = Kp1 - 1

    # 1) normalize padded image batch (ImageList.from_tensors is identity here).
    #    images_raw may be uint8; the kernel casts internally.
    images = normalize_images(images_raw, pixel_mean, pixel_std)
    # TODO(synk): features = backbone(images); outputs = sem_seg_head(features)
    #             — external detectron2 modules; pred_logits / pred_masks_lowres
    #             stand in for outputs['pred_logits'] / outputs['pred_masks'].

    # 2) scores = softmax(weight * logits); drop no-object column in glue.
    sm = temperature_softmax(pred_logits, softmax_temperature)       # (B, Q, K+1)
    scores = sm[..., :K]

    # 3) top-k over flattened (Q*K), label = idx % K, query = idx // K  (glue)
    flat = scores.reshape(B, Q * K)
    topk_scores, topk_idx = jax.lax.top_k(flat, test_topk_per_image)
    labels_per_image = topk_idx % K
    query_idx = topk_idx // K

    # 4) gather only the SELECTED low-res masks (cheap), then the fused kernel
    #    resizes + thresholds + reduces; no full-res f32 masks ever hit HBM.
    gathered = jax.vmap(lambda mm, idx: mm[idx])(
        pred_masks_lowres.astype(compute_dtype), query_idx)          # (B, T, h, w)
    pred_masks_u8, stats = fused_resize_gather_score(
        gathered, H, W, t_tile=fused_t_tile, compute_dtype=compute_dtype,
        score_sigmoid_dtype=score_sigmoid_dtype,
        vmem_limit_bytes=fused_vmem_limit_bytes)

    # 5) final scores and boxes from the tiny per-instance stats (glue).
    num = stats[..., 0]
    den = stats[..., 1]
    mask_scores = num / (den + 1e-6)
    final_scores = topk_scores * mask_scores
    boxes = jnp.stack([stats[..., 2], stats[..., 3],
                       stats[..., 4] + 1.0, stats[..., 5] + 1.0], axis=-1)
    boxes = jnp.where((den > 0.0)[..., None], boxes, 0.0)            # empty -> 0

    results = []
    for b in range(B):
        results.append({
            "instances": {
                "pred_masks": pred_masks_u8[b],        # uint8 {0,1}
                "pred_boxes": boxes[b],
                "scores": final_scores[b],
                "pred_classes": labels_per_image[b],
            }
        })
    return images, results


# ----------------------------------------------------------------------------
# Correctness spot-checks (pure JAX / numpy references)
# ----------------------------------------------------------------------------
if __name__ == "__main__":
    # Small synthetic shapes.
    B, C, H, W = 2, 3, 16, 16        # image batch (NCHW), size_divisibility=16
    Q = 8                            # num_queries
    Kp1 = 8                          # num_classes + 1 ("no object")
    h, w = 8, 8                      # head-resolution masks
    TOPK = 8                         # test_topk_per_image
    TEMPERATURE = 0.1                # softmax_temperature ("weight")

    key = jax.random.PRNGKey(0)
    k1, k2, k3 = jax.random.split(key, 3)
    # raw images as uint8 (realistic detectron2 input; the kernel casts inside)
    images_raw = jax.random.randint(k1, (B, C, H, W), 0, 256,
                                    dtype=jnp.int32).astype(jnp.uint8)
    pred_logits = jax.random.normal(k2, (B, Q, Kp1), jnp.float32)
    pred_masks_lowres = jax.random.normal(k3, (B, Q, h, w), jnp.float32) * 2.0

    pixel_mean = jnp.array([123.675, 116.280, 103.530], jnp.float32)
    pixel_std = jnp.array([58.395, 57.120, 57.375], jnp.float32)

    images_norm, results = d2zero_inference(
        images_raw, pred_logits, pred_masks_lowres,
        pixel_mean=pixel_mean, pixel_std=pixel_std,
        softmax_temperature=TEMPERATURE, test_topk_per_image=TOPK)

    jax.block_until_ready(images_norm)
    for r in results:
        jax.block_until_ready(r["instances"]["scores"])
        jax.block_until_ready(r["instances"]["pred_masks"])

    # 1) normalization kernel vs plain JAX.
    ref_imgs = ((images_raw.astype(jnp.float32) - pixel_mean.reshape(1, C, 1, 1))
                / pixel_std.reshape(1, C, 1, 1))
    np.testing.assert_allclose(np.asarray(images_norm), np.asarray(ref_imgs),
                               rtol=1e-5, atol=1e-5)

    # 2) temperature softmax kernel vs jax.nn.softmax.
    sm_kernel = temperature_softmax(pred_logits, TEMPERATURE)
    sm_jax = jax.nn.softmax(TEMPERATURE * pred_logits, axis=-1)
    np.testing.assert_allclose(np.asarray(sm_kernel), np.asarray(sm_jax),
                               rtol=1e-5, atol=1e-6)

    # 3) fused kernel vs a pure-JAX reference replicating the same bf16
    #    interpolation (same top-k indices as the pipeline glue).
    K = Kp1 - 1
    flat = sm_kernel[..., :K].reshape(B, Q * K)
    ts, ti = jax.lax.top_k(flat, TOPK)
    qi = ti // K
    g = jax.vmap(lambda mm, idx: mm[idx])(
        pred_masks_lowres.astype(jnp.bfloat16), qi)                   # (B, T, h, w)
    wrow_r = jnp.asarray(_bilinear_matrix(H, h), jnp.bfloat16)
    wcolT_r = jnp.asarray(_bilinear_matrix(W, w).T, jnp.bfloat16)
    t1 = jnp.einsum("Hh,bthw->btHw", wrow_r, g,
                    preferred_element_type=jnp.float32)
    resized = jnp.einsum("btHw,wW->btHW", t1.astype(jnp.bfloat16), wcolT_r,
                         preferred_element_type=jnp.float32)
    pm_ref = np.asarray(resized) > 0.0
    pm_f = pm_ref.astype(np.float32)
    sig = np.asarray(jax.nn.sigmoid(resized))                        # f32 reference
    num_ref = (sig * pm_f).sum(axis=(2, 3))
    den_ref = pm_f.sum(axis=(2, 3))
    scores_ref = np.asarray(ts) * (num_ref / (den_ref + 1e-6))

    got_masks = np.stack([np.asarray(r["instances"]["pred_masks"]) for r in results])
    got_scores = np.stack([np.asarray(r["instances"]["scores"]) for r in results])
    got_boxes = np.stack([np.asarray(r["instances"]["pred_boxes"]) for r in results])
    got_labels = np.stack([np.asarray(r["instances"]["pred_classes"]) for r in results])

    # binary masks (allow a vanishingly-unlikely handful of threshold flips
    # from matmul accumulation-order ULP differences).
    mismatch = np.mean(got_masks.astype(np.int32) != pm_ref.astype(np.int32))
    assert mismatch < 0.01, f"binary mask mismatch fraction {mismatch}"

    # scores and labels (kernel uses bf16 sigmoid for the score accumulation,
    # reference uses f32 sigmoid -> tolerance covers the ~0.4% bf16 delta).
    np.testing.assert_allclose(got_scores, scores_ref, rtol=2e-2, atol=2e-2)
    np.testing.assert_array_equal(got_labels, np.asarray(ti % K))

    # bounding boxes: exact against BitMasks.get_bounding_boxes semantics
    # recomputed (numpy) from the kernel's own binary masks.
    ref_boxes = np.zeros((B, TOPK, 4), np.float32)
    for b in range(B):
        for t in range(TOPK):
            ys, xs = np.nonzero(got_masks[b, t])
            if len(xs) > 0:
                ref_boxes[b, t] = [xs.min(), ys.min(), xs.max() + 1, ys.max() + 1]
    np.testing.assert_allclose(got_boxes, ref_boxes, rtol=0, atol=1e-6)

    print("KERNEL_OK")
</pallas_src>

<mosaic_0001>
module attributes {stable_mosaic.version = 11 : i64} {
  func.func @kernel(%arg0: i32, %arg1: i32, %arg2: memref<1x3x16x16xi8, #tpu.memory_space<vmem>>, %arg3: memref<1x3x16x16xf32, #tpu.memory_space<vmem>>) attributes {dimension_semantics = [#tpu.dimension_semantics<parallel>, #tpu.dimension_semantics<parallel>], iteration_bounds = array<i64: 2, 1>, scalar_prefetch = 0 : i64, scratch_operands = 0 : i64, tpu.core_type = #tpu.core_type<tc>, window_params = [{transform_indices = @transform_0, window_bounds = array<i64: 1, 3, 16, 16>}, {transform_indices = @transform_1, window_bounds = array<i64: 1, 3, 16, 16>}]} {
    %c0 = arith.constant 0 : index
    %c0_0 = arith.constant 0 : index
    %c0_1 = arith.constant 0 : index
    %c0_2 = arith.constant 0 : index
    %0 = vector.load %arg2[%c0, %c0_0, %c0_1, %c0_2] : memref<1x3x16x16xi8, #tpu.memory_space<vmem>>, vector<1x1x16x16xi8>
    %1 = vector.shape_cast %0 : vector<1x1x16x16xi8> to vector<16x16xi8>
    %2 = arith.uitofp %1 : vector<16x16xi8> to vector<16x16xf32>
    %cst = arith.constant 1.236750e+02 : f32
    %3 = vector.broadcast %cst : f32 to vector<16x16xf32>
    %4 = arith.subf %2, %3 : vector<16x16xf32>
    %cst_3 = arith.constant 0.0171247534 : f32
    %5 = vector.broadcast %cst_3 : f32 to vector<16x16xf32>
    %6 = arith.mulf %4, %5 : vector<16x16xf32>
    %c0_4 = arith.constant 0 : index
    %c0_5 = arith.constant 0 : index
    %c0_6 = arith.constant 0 : index
    %c0_7 = arith.constant 0 : index
    %7 = vector.load %arg3[%c0_4, %c0_5, %c0_6, %c0_7] : memref<1x3x16x16xf32, #tpu.memory_space<vmem>>, vector<1x1x16x16xf32>
    %8 = vector.shape_cast %7 : vector<1x1x16x16xf32> to vector<16x16xf32>
    %9 = vector.shape_cast %6 : vector<16x16xf32> to vector<1x1x16x16xf32>
    tpu.vector_store %arg3[%c0_4, %c0_5, %c0_6, %c0_7], %9 {strides = array<i32>} : memref<1x3x16x16xf32, #tpu.memory_space<vmem>>, vector<1x1x16x16xf32>,
    %c0_8 = arith.constant 0 : index
    %c1 = arith.constant 1 : index
    %c0_9 = arith.constant 0 : index
    %c0_10 = arith.constant 0 : index
    %10 = vector.load %arg2[%c0_8, %c1, %c0_9, %c0_10] : memref<1x3x16x16xi8, #tpu.memory_space<vmem>>, vector<1x1x16x16xi8>
    %11 = vector.shape_cast %10 : vector<1x1x16x16xi8> to vector<16x16xi8>
    %12 = arith.uitofp %11 : vector<16x16xi8> to vector<16x16xf32>
    %cst_11 = arith.constant 1.162800e+02 : f32
    %13 = vector.broadcast %cst_11 : f32 to vector<16x16xf32>
    %14 = arith.subf %12, %13 : vector<16x16xf32>
    %cst_12 = arith.constant 0.0175070036 : f32
    %15 = vector.broadcast %cst_12 : f32 to vector<16x16xf32>
    %16 = arith.mulf %14, %15 : vector<16x16xf32>
    %c0_13 = arith.constant 0 : index
    %c1_14 = arith.constant 1 : index
    %c0_15 = arith.constant 0 : index
    %c0_16 = arith.constant 0 : index
    %17 = vector.load %arg3[%c0_13, %c1_14, %c0_15, %c0_16] : memref<1x3x16x16xf32, #tpu.memory_space<vmem>>, vector<1x1x16x16xf32>
    %18 = vector.shape_cast %17 : vector<1x1x16x16xf32> to vector<16x16xf32>
    %19 = vector.shape_cast %16 : vector<16x16xf32> to vector<1x1x16x16xf32>
    tpu.vector_store %arg3[%c0_13, %c1_14, %c0_15, %c0_16], %19 {strides = array<i32>} : memref<1x3x16x16xf32, #tpu.memory_space<vmem>>, vector<1x1x16x16xf32>,
    %c0_17 = arith.constant 0 : index
    %c2 = arith.constant 2 : index
    %c0_18 = arith.constant 0 : index
    %c0_19 = arith.constant 0 : index
    %20 = vector.load %arg2[%c0_17, %c2, %c0_18, %c0_19] : memref<1x3x16x16xi8, #tpu.memory_space<vmem>>, vector<1x1x16x16xi8>
    %21 = vector.shape_cast %20 : vector<1x1x16x16xi8> to vector<16x16xi8>
    %22 = arith.uitofp %21 : vector<16x16xi8> to vector<16x16xf32>
    %cst_20 = arith.constant 1.035300e+02 : f32
    %23 = vector.broadcast %cst_20 : f32 to vector<16x16xf32>
    %24 = arith.subf %22, %23 : vector<16x16xf32>
    %cst_21 = arith.constant 0.0174291935 : f32
    %25 = vector.broadcast %cst_21 : f32 to vector<16x16xf32>
    %26 = arith.mulf %24, %25 : vector<16x16xf32>
    %c0_22 = arith.constant 0 : index
    %c2_23 = arith.constant 2 : index
    %c0_24 = arith.constant 0 : index
    %c0_25 = arith.constant 0 : index
    %27 = vector.load %arg3[%c0_22, %c2_23, %c0_24, %c0_25] : memref<1x3x16x16xf32, #tpu.memory_space<vmem>>, vector<1x1x16x16xf32>
    %28 = vector.shape_cast %27 : vector<1x1x16x16xf32> to vector<16x16xf32>
    %29 = vector.shape_cast %26 : vector<16x16xf32> to vector<1x1x16x16xf32>
    tpu.vector_store %arg3[%c0_22, %c2_23, %c0_24, %c0_25], %29 {strides = array<i32>} : memref<1x3x16x16xf32, #tpu.memory_space<vmem>>, vector<1x1x16x16xf32>,
    return
  }
  func.func @transform_0(%arg0: i32, %arg1: i32) -> (i32, i32, i32, i32) {
    %c0_i32 = arith.constant 0 : i32
    %c0_i32_0 = arith.constant 0 : i32
    %c0_i32_1 = arith.constant 0 : i32
    return %arg0, %c0_i32, %arg1, %c0_i32_0 : i32, i32, i32, i32
  }
  func.func @transform_1(%arg0: i32, %arg1: i32) -> (i32, i32, i32, i32) {
    %c0_i32 = arith.constant 0 : i32
    %c0_i32_0 = arith.constant 0 : i32
    %c0_i32_1 = arith.constant 0 : i32
    return %arg0, %c0_i32, %arg1, %c0_i32_0 : i32, i32, i32, i32
  }
}

</mosaic_0001>

<bundles_post_ra>
// kernel: tpu_custom_call.1
= control target key start
LH: loop header
LB: loop body
LE: loop exit
PB: predicated region body
PF: predicated region fallthrough
CT: control target
= control target key end

     0   :  { %6 = vsyncpa [#allocation3], 0  ;;  %s725_s0 = inlined_call_operand.hbm [shape: u8[2,3,16,16], index: 0, kind: input, shape index: {}]   ;;  %s726_s1 = inlined_call_operand.hbm [shape: f32[2,3,16,16], index: 1, kind: output, shape index: {}]  }
   0x1   :  { %8 = vsyncpa [#allocation3 + $0x1], 0 }
   0x2   :  { %9 = vsyncpa [#allocation4], 0 }
   0x3   :  { %11 = vsyncpa [#allocation4 + $0x1], 0  ;;  %s543_s6 = smov 0   ;;  %s545_s7 = smov 0  }
   0x4   :  { %s547_s8 = smov 0   ;;  %s549_s9 = smov 0  }
   0x5   :  { %s551_s10 = smov 0   ;;  %s553_s11 = smov 0  }
   0x6 LB: > { %s305_s12 = sadd.s32 4294967295, %s525_s11   ;;  %s306_s13 = sadd.s32 4294967294, %s525_s11   ;;  %s525_s11 = sphi %s553_s11, %s17_s11   ;;  %s521_s10 = sphi %s551_s10, %s741_s10   ;;  %s517_s9 = sphi %s549_s9, %s740_s9   ;;  %s513_s8 = sphi %s547_s8, %s739_s8   ;;  %s509_s7 = sphi %s545_s7, %s738_s7   ;;  %s505_s6 = sphi %s543_s6, %s737_s6  }
   0x7   : > { %s29_s14 = sadd.s32 1, %s521_s10  ;;  %s38_s15 = sadd.s32 1, %s513_s8 }
   0x8   : > { %p31_p0 = scmp.ge.s32.totalorder %s29_s14, 2  ;;  %p45_p1 = scmp.ne.s32.totalorder %s513_s8, %s509_s7 }
   0x9   : > { %p46_p2 = scmp.eq.s32.totalorder %s525_s11, 0  ;;  %p51_p3 = scmp.ne.s32.totalorder %s509_s7, %s505_s6 }
   0xa   : > { %s743_s14 = smov (%p31_p0, %s29_s14), 0  ;;  %p52_p5 = scmp.eq.s32.totalorder %s305_s12, 0 }
   0xb   : > { %p584_p4 = por %p46_p2, %p45_p1  ;;  %s33_s17 = ssub.s32 %s521_s10, %s743_s14 }
   0xc   : > { %p77_p6 = scmp.eq.s32.totalorder %s305_s12, 1  ;;  %p36_p7 = scmp.eq.s32.totalorder %s33_s17, 0 }
   0xd   : > { %p590_p8 = por %p52_p5, %p51_p3  ;;  %p83_p10 = scmp.eq.s32.totalorder %s306_s13, 1 }
   0xe   : > { %p594_p9 = por %p77_p6, %p45_p1  ;;  %p359_p13 = scmp.lt.s32.totalorder %s525_s11, 2 }
   0xf   : > { %s599_s20 = scalar_select %p36_p7, %s513_s8, %s38_s15  }
  0x10   : > { %s730_s19 = scalar_select %p594_p9, 1, 0 }
  0x11   : > { %p601_p11 = por %p83_p10, %p51_p3  ;;  %s103_s22 = sand.u32 1, %s513_s8  }
  0x12   : > { %s342_s23 = smul.u32 12, %s103_s22  ;;  %p611_p0 = pnand %p359_p13, %p584_p4 }
  0x13   : > { %s731_s21 = scalar_select %p601_p11, 1, 0 }
  0x14   : > { %s343_s24 = smul.u32 192, %s521_s10  ;;  %s107_s29 = scalar_lea.vmem [#allocation2], %s342_s23 }
  0x15   : > { %s116_s30 = sshll.u32 %s107_s29, 4  ;;  %s623_s2 = scalar_lea.sflag [#allocation3], %s103_s22  ;;  %s620_s30 = int_to_ptr.vmem [resolvable:$true] %s116_s30 }
  0x16   : > { %s618_s28 = scalar_lea.hbm %s725_s0, %s343_s24  ;;  %p415_p3 = pneg %p611_p0 }
  0x17   : > { %s413_s3 = scalar_lea.hbm %s618_s28, 192  ;;  %s418_s12 = scalar_lea.hbm %s725_s0, 384 }
  0x18   : > { %p414_p2 = scmp.ne.s32.totalorder %s618_s28, %s413_s3  ;;  %p419_p6 = scmp.lt.u32.totalorder %s618_s28, %s725_s0 }
  0x19   : > { %p420_p7 = scmp.lt.u32.totalorder %s418_s12, %s413_s3  ;;  %p422_p13 = scmp.lt.u32.totalorder %s413_s3, %s618_s28 }
  0x1a   : > { %p416_p4 = pnand %p415_p3, %p414_p2 }
  0x1b   : > { %p421_p10 = por %p420_p7, %p419_p6 }
  0x1c   : > { %p417_p5 = pneg %p416_p4 }
  0x1d   : > { %p423_p12 = por %p422_p13, %p421_p10 }
  0x1f   : > { %p424_p1 = pnand %p423_p12, %p417_p5 }
  0x21   : > { %427 = shalt.err (!%p424_p1)
}
  0x22   : > { %s428_s16 = scalar_lea.vmem %s620_s30, 192  ;;  %s527_s17 = smov [#allocation2]  }
  0x23   : > { %p429_p2 = scmp.ne.s32.totalorder %s620_s30, %s428_s16  ;;  %s433_s22 = sshll.u32 %s527_s17, 4  ;;  %s434_s22 = int_to_ptr.vmem [resolvable:$false] %s433_s22 }
  0x24   : > { %s435_s23 = scalar_lea.vmem %s434_s22, 384  ;;  %p436_p9 = scmp.lt.s32.totalorder %s620_s30, %s434_s22 }
  0x25   : > { %p431_p4 = pnand %p429_p2, %p415_p3  ;;  %p437_p6 = scmp.lt.s32.totalorder %s435_s23, %s428_s16 }
  0x27   : > { %p432_p11 = pneg %p431_p4  ;;  %p438_p7 = por %p437_p6, %p436_p9 }
  0x29   : > { %p439_p10 = pnand %p438_p7, %p432_p11 }
  0x2b   : > { %442 = shalt.err (!%p439_p10)
}
  0x2c   : > { %s528_s24 = smov 32   ;;  %s529_s26 = smov 2  }
  0x2d   : > { %354 = dma.hbm_to_vmem [thread:$0]  (!%p611_p0), %s618_s28, 192, %s620_s30, %s623_s2, %s528_s24, %s528_s24, %s529_s26  }
  0x2e   : > { %p124_p12 = scmp.lt.s32.totalorder %s525_s11, 3  ;;  %p733_p1 = scmp.ge.s32.totalorder %s525_s11, 1 }
  0x30   : > { %p125_p3 = pnand %p733_p1, %p124_p12 }
  0x31   : > { %s655_s27 = sand.u32 (!%p125_p3), 1, %s509_s7  }
  0x32   : > { %128 = sbr.rel (%p125_p3) target bundleno = 86 (0x56), region = 24  ;;  %s131_s3 = scalar_lea.sflag (!%p125_p3), [#allocation3], %s655_s27 }
  0x33   : > { %s344_s29 = smul.u32 (!%p125_p3), 12, %s655_s27 }
  0x35   : > { %s134_s4 = scalar_lea.vmem (!%p125_p3), [#allocation2], %s344_s29 }
  0x39   : > { %496 = dma.done.wait (%p590_p8), %s131_s3, 192  }
  0x3a   : > { %498 = vsyncadd (%p590_p8), %s131_s3, 4294967104  ;;  %s345_s25 = smul.u32 48, %s655_s27  ;;  %v329_v0 = vld [vmem:[%s134_s4] sm:$0xff]   ;;  %v341_v1 = vld [vmem:[%s134_s4 + $0x8] sm:$0xf]   ;;  %vm167_vm0 = vcmask 130048  }
  0x3b   : > { %v330_v2 = vunpack.c.0.s8 %v329_v0  ;;  %v331_v3 = vunpack.c.1.s8 %v329_v0  ;;  %v334_v4 = vunpack.c.2.s8 %v329_v0  ;;  %v335_v5 = vunpack.c.3.s8 %v329_v0  ;;  %s346_s18 = smul.u32 768, %s517_s9  ;;  %s203_s12 = scalar_lea.sflag [#allocation4], %s655_s27 }
  0x3c   : > { %v338_v6 = vunpack.c.0.s8 %v341_v1  ;;  %v339_v7 = vunpack.c.1.s8 %v341_v1  ;;  %s152_s28 = scalar_lea.vmem [#allocation5], %s345_s25  ;;  %p734_p9 = scmp.ne.s32.totalorder %s730_s19, 0 }
  0x3d   : > { %v159_v8 = vand.u32 255, %v330_v2  ;;  %v160_v9 = vand.u32 255, %v331_v3  ;;  %v175_v10 = vand.u32 255, %v334_v4  ;;  %v176_v11 = vand.u32 255, %v335_v5  ;;  %s218_s30 = sshll.u32 %s152_s28, 4  ;;  %s670_s5 = scalar_lea.hbm %s726_s1, %s346_s18  ;;  %s665_s30 = int_to_ptr.vmem [resolvable:$true] %s218_s30 }
  0x3e   : > { %v191_v12 = vand.u32 255, %v338_v6  ;;  %v192_v13 = vand.u32 255, %v339_v7  ;;  %s443_s13 = scalar_lea.vmem %s665_s30, 768  ;;  %s530_s15 = smov [#allocation5]  }
  0x3f   : > { %v161_v14 = vcvt.s32.f32 %v159_v8  ;;  %v162_v15 = vcvt.s32.f32 %v160_v9  ;;  %v177_v16 = vcvt.s32.f32 %v175_v10  ;;  %v178_v17 = vcvt.s32.f32 %v176_v11  ;;  %p444_p8 = scmp.ne.s32.totalorder %s665_s30, %s443_s13  ;;  %s447_s16 = sshll.u32 %s530_s15, 4  ;;  %s448_s16 = int_to_ptr.vmem [resolvable:$false] %s447_s16 }
  0x40   : > { %v193_v18 = vcvt.s32.f32 %v191_v12  ;;  %v194_v19 = vcvt.s32.f32 %v192_v13  ;;  %s449_s17 = scalar_lea.vmem %s448_s16, 1536  ;;  %p450_p5 = scmp.lt.s32.totalorder %s665_s30, %s448_s16 }
  0x41   : > { %v311_v20 = vadd.f32 -123.675, %v161_v14  ;;  %v312_v21 = vadd.f32 -123.675, %v162_v15  ;;  %v315_v22 = vadd.f32 -116.28, %v177_v16  ;;  %p445_p11 = pnand %p444_p8, %p734_p9  ;;  %p451_p13 = scmp.lt.s32.totalorder %s449_s17, %s443_s13 }
  0x42   : > { %v316_v23 = vadd.f32 -116.28, %v178_v17  ;;  %v321_v24 = vadd.f32 -103.53, %v193_v18  ;;  %v322_v25 = vadd.f32 -103.53, %v194_v19 }
  0x43   : > { %v165_v26 = vmul.f32 0.017124753, %v311_v20  ;;  %v166_v27 = vmul.f32 0.017124753, %v312_v21  ;;  %v181_v28 = vmul.f32 0.017507004, %v315_v22  ;;  %p446_p0 = pneg %p445_p11  ;;  %p452_p2 = por %p451_p13, %p450_p5 }
  0x44   : > { %v182_v29 = vmul.f32 0.017507004, %v316_v23  ;;  %v197_v30 = vmul.f32 0.017429193, %v321_v24  ;;  %v198_v31 = vmul.f32 0.017429193, %v322_v25 }
  0x45   : > { %168 = vst.msk [vmem:[%s152_s28] sm:$0xff] %vm167_vm0, %v165_v26  ;;  %169 = vst.msk [vmem:[%s152_s28 + $0x8] sm:$0xff] %vm167_vm0, %v166_v27  ;;  %p453_p4 = pnand %p452_p2, %p446_p0 }
  0x46   : > { %317 = vst.msk [vmem:[%s152_s28 + $0x10] sm:$0xff] %vm167_vm0, %v181_v28  ;;  %318 = vst.msk [vmem:[%s152_s28 + $0x18] sm:$0xff] %vm167_vm0, %v182_v29 }
  0x47   : > { %323 = vst.msk [vmem:[%s152_s28 + $0x20] sm:$0xff] %vm167_vm0, %v197_v30  ;;  %324 = vst.msk [vmem:[%s152_s28 + $0x28] sm:$0xff] %vm167_vm0, %v198_v31 }
  0x48   : > { %456 = shalt.err (!%p453_p4)
}
  0x49   : > { %s457_s22 = scalar_lea.hbm %s670_s5, 768  ;;  %s461_s26 = scalar_lea.hbm %s726_s1, 1536 }
  0x4a   : > { %p458_p6 = scmp.ne.s32.totalorder %s670_s5, %s457_s22  ;;  %p462_p12 = scmp.lt.u32.totalorder %s670_s5, %s726_s1 }
  0x4b   : > { %p463_p1 = scmp.lt.u32.totalorder %s461_s26, %s457_s22  ;;  %p465_p8 = scmp.lt.u32.totalorder %s457_s22, %s670_s5 }
  0x4c   : > { %p459_p7 = pnand %p458_p6, %p734_p9 }
  0x4d   : > { %p464_p3 = por %p463_p1, %p462_p12 }
  0x4e   : > { %p460_p10 = pneg %p459_p7 }
  0x4f   : > { %p466_p11 = por %p465_p8, %p464_p3 }
  0x51   : > { %p467_p0 = pnand %p466_p11, %p460_p10 }
  0x53   : > { %470 = shalt.err (!%p467_p0)
}
  0x54   : > { %s531_s4 = smov 128   ;;  %s532_s25 = smov 8  }
  0x55   : > { %349 = dma.vmem_to_hbm [thread:$0]  (%p734_p9), %s665_s30, 768, %s670_s5, %s203_s12, %s531_s4, %s531_s4, %s532_s25  }
  0x56 PF: > { %s233_s18 = sand.u32 1, %s505_s6   ;;  %p735_p5 = scmp.ne.s32.totalorder %s731_s21, 0 }
  0x57   : > { %p736_p13 = scmp.ge.s32.totalorder %s525_s11, 2  ;;  %s234_s28 = scalar_lea.sflag [#allocation4], %s233_s18 }
  0x59   : > { %p356_p2 = pnand %p736_p13, %p735_p5 }
  0x5b   : > { %500 = dma.done.wait (!%p356_p2), %s234_s28, 768  }
  0x5c   : > { %502 = vsyncadd (!%p356_p2), %s234_s28, 4294966528  ;;  %s17_s11 = sadd.s32 1, %s525_s11   ;;  %s737_s6 = smov %s509_s7 }
  0x5d   : > { %p14_p4 = scmp.ge.s32.totalorder %s17_s11, 4   ;;  %s738_s7 = smov %s513_s8 }
  0x5e   : > { %s739_s8 = smov %s599_s20  ;;  %s740_s9 = smov %s521_s10 }
  0x5f   : > { %s741_s10 = smov %s743_s14  ;;  %16 = sbr.rel (!%p14_p4) target bundleno = 6 (0x6), region = 73 }
  0x66   :  { %239 = vsyncpa [#allocation3], 1 }
  0x67   :  { %241 = vsyncpa [#allocation3 + $0x1], 1 }
  0x68   :  { %242 = vsyncpa [#allocation4], 1 }
  0x69   :  { %244 = vsyncpa [#allocation4 + $0x1], 1 }

</bundles_post_ra>
